<compile_context>
chip_gen: v5e
topology: v5e:2x2
jax: 0.10.0
libtpu: 0.0.40
codegen_flags: <defaults>
</compile_context>

<pallas_src>
import jax
import jax.numpy as jnp
from jax.experimental import pallas as pl
from jax.experimental.pallas import tpu as pltpu

# SELU constants (match torch.nn.SELU defaults).
_SELU_ALPHA = 1.6732632423543772
_SELU_SCALE = 1.0507009873554805


def _selu_unscaled(x):
    """SELU without the output scale (scale is folded into the next layer's W)."""
    x = x.astype(jnp.float32)
    # exp only sees the clamped-negative branch, so the unselected side of the
    # jnp.where never produces inf.
    neg = _SELU_ALPHA * (jnp.exp(jnp.minimum(x, 0.0)) - 1.0)
    return jnp.where(x > 0, x, neg)


def _mlp_kernel(x_ref, w1_ref, b1_ref, w2_ref, b2_ref, w3_ref, b3_ref,
                w4_ref, b4_ref, o_ref):
    wdt = w1_ref.dtype            # MXU operand dtype (bf16 default, or f32)
    x = x_ref[...].astype(wdt)    # per-tile, in-register cast (no HBM pass)
    h = jnp.dot(x, w1_ref[...], preferred_element_type=jnp.float32)
    h = _selu_unscaled(h + b1_ref[...])           # scale folded into w2
    h = jnp.dot(h.astype(wdt), w2_ref[...], preferred_element_type=jnp.float32)
    h = _selu_unscaled(h + b2_ref[...])           # scale folded into w3
    h = jnp.dot(h.astype(wdt), w3_ref[...], preferred_element_type=jnp.float32)
    h = _selu_unscaled(h + b3_ref[...])           # scale folded into w4
    y = jnp.dot(h.astype(wdt), w4_ref[...], preferred_element_type=jnp.float32)
    o_ref[...] = (y + b4_ref[...]).astype(o_ref.dtype)


def _round_up(n, m):
    return ((n + m - 1) // m) * m


def _pad_cols(a, cols):
    return jnp.pad(a, ((0, 0), (0, cols - a.shape[1])))


def _pad_rows(a, rows):
    return jnp.pad(a, ((0, rows - a.shape[0]), (0, 0)))


def prepare_params(params, *, matmul_dtype=jnp.bfloat16):
    """One-time layout/dtype preparation.  Call ONCE outside the hot path.

    - hidden feature axes padded to a multiple of 128 (zero pad -> exact math);
    - SELU output scale of layers 1-3 folded into w2/w3/w4;
    - weights cast to `matmul_dtype` (bf16 default = native MXU rate; pass
      jnp.float32 to opt out) regardless of the caller's stored dtype;
    - biases kept in f32 (added to the f32 accumulator);
    - dim_in (w1 rows) and out_dim (w4 cols) are NOT padded.
    """
    w = [jnp.asarray(params[f"w{i}"], jnp.float32) for i in range(1, 5)]
    b = [jnp.asarray(params[f"b{i}"], jnp.float32).reshape(1, -1)
         for i in range(1, 5)]

    h1, h2, h3 = w[0].shape[1], w[1].shape[1], w[2].shape[1]
    p1, p2, p3 = (_round_up(h, 128) for h in (h1, h2, h3))

    # Fold the SELU output scale of the preceding activation into the consumer.
    w[1] = w[1] * _SELU_SCALE
    w[2] = w[2] * _SELU_SCALE
    w[3] = w[3] * _SELU_SCALE

    w1 = _pad_cols(w[0], p1)
    w2 = _pad_cols(_pad_rows(w[1], p1), p2)
    w3 = _pad_cols(_pad_rows(w[2], p2), p3)
    w4 = _pad_rows(w[3], p3)                      # out_dim stays unpadded
    b1, b2, b3, b4 = _pad_cols(b[0], p1), _pad_cols(b[1], p2), _pad_cols(b[2], p3), b[3]

    return {
        "w1": w1.astype(matmul_dtype), "b1": b1,
        "w2": w2.astype(matmul_dtype), "b2": b2,
        "w3": w3.astype(matmul_dtype), "b3": b3,
        "w4": w4.astype(matmul_dtype), "b4": b4,
    }


def _const_spec(shape, buffer_count=1):
    index_map = lambda i: (0,) * len(shape)
    try:
        # Grid-invariant block: one pipeline buffer is enough (halves resident
        # weight VMEM vs. the default double buffering).
        return pl.BlockSpec(shape, index_map,
                            pipeline_mode=pl.Buffered(buffer_count))
    except TypeError:  # older jax without the pipeline_mode kwarg
        return pl.BlockSpec(shape, index_map)


def mlp_forward(x, prepped, *, batch_tile=None, out_dtype=None, interpret=False):
    """Forward pass.  `prepped` must come from prepare_params (called once)."""
    B, dim_in = x.shape
    out_dim = prepped["w4"].shape[1]
    hidden_pad = max(prepped["w1"].shape[1], prepped["w2"].shape[1],
                     prepped["w3"].shape[1])
    assert prepped["w1"].shape[0] == dim_in, (
        "x feature width must match w1 rows "
        "(for time_varying models concat t onto x before calling)")
    if out_dtype is None:
        out_dtype = x.dtype

    # Batch tiling: multiples of 128, capped at 512 rows, and (when B allows)
    # >=2 grid steps so both v7x TensorCores get work and DMA overlaps compute.
    if batch_tile is None:
        batch_tile = min(512, _round_up(max((B + 1) // 2, 1), 128))
    batch_tile = max(128, _round_up(batch_tile, 128))
    B_pad = _round_up(B, batch_tile)
    # Only the batch axis is ever padded; padded rows are discarded below.
    x_in = x if B_pad == B else jnp.pad(x, ((0, B_pad - B), (0, 0)))
    grid = (B_pad // batch_tile,)

    weight_keys = ("w1", "b1", "w2", "b2", "w3", "b3", "w4", "b4")
    weight_args = [prepped[k] for k in weight_keys]

    in_specs = [pl.BlockSpec((batch_tile, dim_in), lambda i: (i, 0))]
    in_specs += [_const_spec(a.shape) for a in weight_args]
    out_spec = pl.BlockSpec((batch_tile, out_dim), lambda i: (i, 0))

    # Explicit VMEM budget: resident weights/biases (single-buffered), double-
    # buffered x/out blocks, headroom for f32 inter-layer intermediates the
    # compiler may spill.  Floor 32 MiB, cap 64 MiB (v7x physical per-TC).
    weight_bytes = sum(a.size * a.dtype.itemsize for a in weight_args)
    vmem_limit = (weight_bytes
                  + 2 * batch_tile * dim_in * x.dtype.itemsize
                  + 2 * batch_tile * out_dim * jnp.dtype(out_dtype).itemsize
                  + 6 * batch_tile * hidden_pad * 4
                  + (2 << 20))
    vmem_limit = int(min(max(vmem_limit, 32 << 20), 64 << 20))

    y = pl.pallas_call(
        _mlp_kernel,
        out_shape=jax.ShapeDtypeStruct((B_pad, out_dim), out_dtype),
        grid_spec=pltpu.PrefetchScalarGridSpec(
            num_scalar_prefetch=0,
            grid=grid,
            in_specs=in_specs,
            out_specs=out_spec,
        ),
        compiler_params=pltpu.CompilerParams(
            dimension_semantics=("parallel",),
            vmem_limit_bytes=vmem_limit,
        ),
        interpret=interpret,
    )(x_in, *weight_args)

    return y if B_pad == B else y[:B]


# ----------------------------------------------------------------------------
# Reference / demo
# ----------------------------------------------------------------------------

def init_params(key, dim, out_dim=None, w=64, time_varying=False,
                dtype=jnp.float32):
    """Deterministic synthetic parameter init (PyTorch-like uniform fan-in)."""
    if out_dim is None:
        out_dim = dim
    dim_in = dim + (1 if time_varying else 0)
    sizes = [(dim_in, w), (w, w), (w, w), (w, out_dim)]
    params = {}
    for idx, (fan_in, fan_out) in enumerate(sizes, start=1):
        key, kw, kb = jax.random.split(key, 3)
        bound = 1.0 / (fan_in ** 0.5)
        params[f"w{idx}"] = jax.random.uniform(
            kw, (fan_in, fan_out), dtype=dtype, minval=-bound, maxval=bound)
        params[f"b{idx}"] = jax.random.uniform(
            kb, (1, fan_out), dtype=dtype, minval=-bound, maxval=bound)
    return params


def _selu_ref(x):
    neg = _SELU_ALPHA * (jnp.exp(jnp.minimum(x, 0.0)) - 1.0)
    return _SELU_SCALE * jnp.where(x > 0, x, neg)


def mlp_reference(x, params):
    h = x.astype(jnp.float32)
    for i in range(1, 4):
        h = _selu_ref(h @ params[f"w{i}"].astype(jnp.float32)
                      + params[f"b{i}"].astype(jnp.float32))
    return h @ params["w4"].astype(jnp.float32) + params["b4"].astype(jnp.float32)


if __name__ == "__main__":
    key = jax.random.PRNGKey(0)
    kp, kx, kx2 = jax.random.split(key, 3)

    dim, hidden, out_dim = 16, 64, 16
    time_varying = False  # TODO(synk): if time_varying=True, concat t onto x in JAX glue before calling the kernel.

    params = init_params(kp, dim, out_dim=out_dim, w=hidden,
                         time_varying=time_varying)

    # One-time parameter prep (pad hidden to 128, fold SELU scale, cast).
    prep_f32 = prepare_params(params, matmul_dtype=jnp.float32)
    prep_bf16 = prepare_params(params)  # bf16 default = fast MXU path

    # f32 operands: tight comparison vs reference.
    x = jax.random.normal(kx, (8, dim), dtype=jnp.float32)
    y = jax.block_until_ready(mlp_forward(x, prep_f32))
    y_ref = mlp_reference(x, params)
    assert y.shape == (8, out_dim)
    assert jnp.allclose(y, y_ref, atol=1e-4, rtol=1e-4), "f32 mismatch vs reference"

    # Non-divisible batch: exercises the multi-step grid and the padded tail.
    x2 = jax.random.normal(kx2, (200, dim), dtype=jnp.float32)
    y2 = jax.block_until_ready(mlp_forward(x2, prep_f32))
    y2_ref = mlp_reference(x2, params)
    assert y2.shape == (200, out_dim)
    assert jnp.allclose(y2, y2_ref, atol=1e-4, rtol=1e-4), "tail mismatch vs reference"

    # bf16 operands (default path): f32 accumulation, looser tolerance since
    # both x and the weights are reduced to bf16 on the MXU.
    y_bf16 = jax.block_until_ready(mlp_forward(x2, prep_bf16))
    err = float(jnp.max(jnp.abs(y_bf16.astype(jnp.float32) - y2_ref)))
    assert err < 1e-1, f"bf16 mismatch vs reference (max abs err {err})"

    print("KERNEL_OK")
</pallas_src>

<mosaic_0001>
module attributes {stable_mosaic.version = 11 : i64} {
  func.func @_mlp_kernel(%arg0: i32, %arg1: memref<128x16xf32, #tpu.memory_space<vmem>>, %arg2: memref<16x128xf32, #tpu.memory_space<vmem>>, %arg3: memref<1x128xf32, #tpu.memory_space<vmem>>, %arg4: memref<128x128xf32, #tpu.memory_space<vmem>>, %arg5: memref<1x128xf32, #tpu.memory_space<vmem>>, %arg6: memref<128x128xf32, #tpu.memory_space<vmem>>, %arg7: memref<1x128xf32, #tpu.memory_space<vmem>>, %arg8: memref<128x16xf32, #tpu.memory_space<vmem>>, %arg9: memref<1x16xf32, #tpu.memory_space<vmem>>, %arg10: memref<128x16xf32, #tpu.memory_space<vmem>>) attributes {dimension_semantics = [#tpu.dimension_semantics<parallel>], iteration_bounds = array<i64: 1>, scalar_prefetch = 0 : i64, scratch_operands = 0 : i64, tpu.core_type = #tpu.core_type<tc>, window_params = [{transform_indices = @transform_0, window_bounds = array<i64: 128, 16>}, {pipeline_mode = #tpu.pipeline_mode<synchronous>, transform_indices = @transform_1, window_bounds = array<i64: 16, 128>}, {pipeline_mode = #tpu.pipeline_mode<synchronous>, transform_indices = @transform_2, window_bounds = array<i64: 1, 128>}, {pipeline_mode = #tpu.pipeline_mode<synchronous>, transform_indices = @transform_3, window_bounds = array<i64: 128, 128>}, {pipeline_mode = #tpu.pipeline_mode<synchronous>, transform_indices = @transform_4, window_bounds = array<i64: 1, 128>}, {pipeline_mode = #tpu.pipeline_mode<synchronous>, transform_indices = @transform_5, window_bounds = array<i64: 128, 128>}, {pipeline_mode = #tpu.pipeline_mode<synchronous>, transform_indices = @transform_6, window_bounds = array<i64: 1, 128>}, {pipeline_mode = #tpu.pipeline_mode<synchronous>, transform_indices = @transform_7, window_bounds = array<i64: 128, 16>}, {pipeline_mode = #tpu.pipeline_mode<synchronous>, transform_indices = @transform_8, window_bounds = array<i64: 1, 16>}, {transform_indices = @transform_9, window_bounds = array<i64: 128, 16>}]} {
    %c0 = arith.constant 0 : index
    %c0_0 = arith.constant 0 : index
    %0 = vector.load %arg1[%c0, %c0_0] : memref<128x16xf32, #tpu.memory_space<vmem>>, vector<128x16xf32>
    %c0_1 = arith.constant 0 : index
    %c0_2 = arith.constant 0 : index
    %1 = vector.load %arg2[%c0_1, %c0_2] : memref<16x128xf32, #tpu.memory_space<vmem>>, vector<16x128xf32>
    %cst = arith.constant dense<0.000000e+00> : vector<128x128xf32>
    %2 = tpu.matmul %0, %1, %cst {dimension_numbers = #tpu.dot_dimension_numbers<[1], [0], [0], [1], [0, 0, 1, 1], [], []>} : vector<128x16xf32>, vector<16x128xf32>, vector<128x128xf32> -> vector<128x128xf32>
    %c0_3 = arith.constant 0 : index
    %c0_4 = arith.constant 0 : index
    %3 = vector.load %arg3[%c0_3, %c0_4] : memref<1x128xf32, #tpu.memory_space<vmem>>, vector<1x128xf32>
    %4 = vector.broadcast %3 : vector<1x128xf32> to vector<128x128xf32>
    %5 = arith.addf %2, %4 : vector<128x128xf32>
    %cst_5 = arith.constant 0.000000e+00 : f32
    %6 = vector.broadcast %cst_5 : f32 to vector<128x128xf32>
    %7 = arith.minimumf %5, %6 : vector<128x128xf32>
    %8 = math.exp %7 : vector<128x128xf32>
    %cst_6 = arith.constant 1.000000e+00 : f32
    %9 = vector.broadcast %cst_6 : f32 to vector<128x128xf32>
    %10 = arith.subf %8, %9 : vector<128x128xf32>
    %cst_7 = arith.constant 1.67326319 : f32
    %11 = vector.broadcast %cst_7 : f32 to vector<128x128xf32>
    %12 = arith.mulf %11, %10 : vector<128x128xf32>
    %cst_8 = arith.constant 0.000000e+00 : f32
    %13 = vector.broadcast %cst_8 : f32 to vector<128x128xf32>
    %14 = arith.cmpf ogt, %5, %13 : vector<128x128xf32>
    %15 = arith.select %14, %5, %12 : vector<128x128xi1>, vector<128x128xf32>
    %c0_9 = arith.constant 0 : index
    %c0_10 = arith.constant 0 : index
    %16 = vector.load %arg4[%c0_9, %c0_10] : memref<128x128xf32, #tpu.memory_space<vmem>>, vector<128x128xf32>
    %cst_11 = arith.constant dense<0.000000e+00> : vector<128x128xf32>
    %17 = tpu.matmul %15, %16, %cst_11 {dimension_numbers = #tpu.dot_dimension_numbers<[1], [0], [0], [1], [0, 0, 1, 1], [], []>} : vector<128x128xf32>, vector<128x128xf32>, vector<128x128xf32> -> vector<128x128xf32>
    %c0_12 = arith.constant 0 : index
    %c0_13 = arith.constant 0 : index
    %18 = vector.load %arg5[%c0_12, %c0_13] : memref<1x128xf32, #tpu.memory_space<vmem>>, vector<1x128xf32>
    %19 = vector.broadcast %18 : vector<1x128xf32> to vector<128x128xf32>
    %20 = arith.addf %17, %19 : vector<128x128xf32>
    %cst_14 = arith.constant 0.000000e+00 : f32
    %21 = vector.broadcast %cst_14 : f32 to vector<128x128xf32>
    %22 = arith.minimumf %20, %21 : vector<128x128xf32>
    %23 = math.exp %22 : vector<128x128xf32>
    %cst_15 = arith.constant 1.000000e+00 : f32
    %24 = vector.broadcast %cst_15 : f32 to vector<128x128xf32>
    %25 = arith.subf %23, %24 : vector<128x128xf32>
    %cst_16 = arith.constant 1.67326319 : f32
    %26 = vector.broadcast %cst_16 : f32 to vector<128x128xf32>
    %27 = arith.mulf %26, %25 : vector<128x128xf32>
    %cst_17 = arith.constant 0.000000e+00 : f32
    %28 = vector.broadcast %cst_17 : f32 to vector<128x128xf32>
    %29 = arith.cmpf ogt, %20, %28 : vector<128x128xf32>
    %30 = arith.select %29, %20, %27 : vector<128x128xi1>, vector<128x128xf32>
    %c0_18 = arith.constant 0 : index
    %c0_19 = arith.constant 0 : index
    %31 = vector.load %arg6[%c0_18, %c0_19] : memref<128x128xf32, #tpu.memory_space<vmem>>, vector<128x128xf32>
    %cst_20 = arith.constant dense<0.000000e+00> : vector<128x128xf32>
    %32 = tpu.matmul %30, %31, %cst_20 {dimension_numbers = #tpu.dot_dimension_numbers<[1], [0], [0], [1], [0, 0, 1, 1], [], []>} : vector<128x128xf32>, vector<128x128xf32>, vector<128x128xf32> -> vector<128x128xf32>
    %c0_21 = arith.constant 0 : index
    %c0_22 = arith.constant 0 : index
    %33 = vector.load %arg7[%c0_21, %c0_22] : memref<1x128xf32, #tpu.memory_space<vmem>>, vector<1x128xf32>
    %34 = vector.broadcast %33 : vector<1x128xf32> to vector<128x128xf32>
    %35 = arith.addf %32, %34 : vector<128x128xf32>
    %cst_23 = arith.constant 0.000000e+00 : f32
    %36 = vector.broadcast %cst_23 : f32 to vector<128x128xf32>
    %37 = arith.minimumf %35, %36 : vector<128x128xf32>
    %38 = math.exp %37 : vector<128x128xf32>
    %cst_24 = arith.constant 1.000000e+00 : f32
    %39 = vector.broadcast %cst_24 : f32 to vector<128x128xf32>
    %40 = arith.subf %38, %39 : vector<128x128xf32>
    %cst_25 = arith.constant 1.67326319 : f32
    %41 = vector.broadcast %cst_25 : f32 to vector<128x128xf32>
    %42 = arith.mulf %41, %40 : vector<128x128xf32>
    %cst_26 = arith.constant 0.000000e+00 : f32
    %43 = vector.broadcast %cst_26 : f32 to vector<128x128xf32>
    %44 = arith.cmpf ogt, %35, %43 : vector<128x128xf32>
    %45 = arith.select %44, %35, %42 : vector<128x128xi1>, vector<128x128xf32>
    %c0_27 = arith.constant 0 : index
    %c0_28 = arith.constant 0 : index
    %46 = vector.load %arg8[%c0_27, %c0_28] : memref<128x16xf32, #tpu.memory_space<vmem>>, vector<128x16xf32>
    %cst_29 = arith.constant dense<0.000000e+00> : vector<128x16xf32>
    %47 = tpu.matmul %45, %46, %cst_29 {dimension_numbers = #tpu.dot_dimension_numbers<[1], [0], [0], [1], [0, 0, 1, 1], [], []>} : vector<128x128xf32>, vector<128x16xf32>, vector<128x16xf32> -> vector<128x16xf32>
    %c0_30 = arith.constant 0 : index
    %c0_31 = arith.constant 0 : index
    %48 = vector.load %arg9[%c0_30, %c0_31] : memref<1x16xf32, #tpu.memory_space<vmem>>, vector<1x16xf32>
    %49 = vector.broadcast %48 : vector<1x16xf32> to vector<128x16xf32>
    %50 = arith.addf %47, %49 : vector<128x16xf32>
    %c0_32 = arith.constant 0 : index
    %c0_33 = arith.constant 0 : index
    %51 = vector.load %arg10[%c0_32, %c0_33] : memref<128x16xf32, #tpu.memory_space<vmem>>, vector<128x16xf32>
    tpu.vector_store %arg10[%c0_32, %c0_33], %50 {strides = array<i32>} : memref<128x16xf32, #tpu.memory_space<vmem>>, vector<128x16xf32>,
    return
  }
  func.func @transform_0(%arg0: i32) -> (i32, i32) {
    %c0_i32 = arith.constant 0 : i32
    %c0_i32_0 = arith.constant 0 : i32
    return %arg0, %c0_i32 : i32, i32
  }
  func.func @transform_1(%arg0: i32) -> (i32, i32) {
    %c0_i32 = arith.constant 0 : i32
    %c0_i32_0 = arith.constant 0 : i32
    %c0_i32_1 = arith.constant 0 : i32
    return %c0_i32, %c0_i32_0 : i32, i32
  }
  func.func @transform_2(%arg0: i32) -> (i32, i32) {
    %c0_i32 = arith.constant 0 : i32
    %c0_i32_0 = arith.constant 0 : i32
    %c0_i32_1 = arith.constant 0 : i32
    return %c0_i32, %c0_i32_0 : i32, i32
  }
  func.func @transform_3(%arg0: i32) -> (i32, i32) {
    %c0_i32 = arith.constant 0 : i32
    %c0_i32_0 = arith.constant 0 : i32
    %c0_i32_1 = arith.constant 0 : i32
    return %c0_i32, %c0_i32_0 : i32, i32
  }
  func.func @transform_4(%arg0: i32) -> (i32, i32) {
    %c0_i32 = arith.constant 0 : i32
    %c0_i32_0 = arith.constant 0 : i32
    %c0_i32_1 = arith.constant 0 : i32
    return %c0_i32, %c0_i32_0 : i32, i32
  }
  func.func @transform_5(%arg0: i32) -> (i32, i32) {
    %c0_i32 = arith.constant 0 : i32
    %c0_i32_0 = arith.constant 0 : i32
    %c0_i32_1 = arith.constant 0 : i32
    return %c0_i32, %c0_i32_0 : i32, i32
  }
  func.func @transform_6(%arg0: i32) -> (i32, i32) {
    %c0_i32 = arith.constant 0 : i32
    %c0_i32_0 = arith.constant 0 : i32
    %c0_i32_1 = arith.constant 0 : i32
    return %c0_i32, %c0_i32_0 : i32, i32
  }
  func.func @transform_7(%arg0: i32) -> (i32, i32) {
    %c0_i32 = arith.constant 0 : i32
    %c0_i32_0 = arith.constant 0 : i32
    %c0_i32_1 = arith.constant 0 : i32
    return %c0_i32, %c0_i32_0 : i32, i32
  }
  func.func @transform_8(%arg0: i32) -> (i32, i32) {
    %c0_i32 = arith.constant 0 : i32
    %c0_i32_0 = arith.constant 0 : i32
    %c0_i32_1 = arith.constant 0 : i32
    return %c0_i32, %c0_i32_0 : i32, i32
  }
  func.func @transform_9(%arg0: i32) -> (i32, i32) {
    %c0_i32 = arith.constant 0 : i32
    %c0_i32_0 = arith.constant 0 : i32
    return %arg0, %c0_i32 : i32, i32
  }
}

</mosaic_0001>

<bundles_post_ra>
// kernel: tpu_custom_call.1
= control target key start
LH: loop header
LB: loop body
LE: loop exit
PB: predicated region body
PF: predicated region fallthrough
CT: control target
= control target key end

     0   :  { %14 = vsyncpa [#allocation3], 0  ;;  %s985_s12 = smov [#allocation2]   ;;  %s1380_s0 = inlined_call_operand.vmem [shape: f32[128,16], index: 0, kind: input, shape index: {}]   ;;  %s1381_s1 = inlined_call_operand.vmem [shape: f32[16,128], index: 1, kind: input, shape index: {}]   ;;  %s1382_s2 = inlined_call_operand.hbm [shape: f32[1,128], index: 2, kind: input, shape index: {}]   ;;  %s1383_s3 = inlined_call_operand.vmem [shape: f32[128,128], index: 3, kind: input, shape index: {}]   ;;  %s1384_s4 = inlined_call_operand.vmem [shape: f32[1,128], index: 4, kind: input, shape index: {}]   ;;  %s1385_s5 = inlined_call_operand.vmem [shape: f32[128,128], index: 5, kind: input, shape index: {}]   ;;  %s1386_s6 = inlined_call_operand.vmem [shape: f32[1,128], index: 6, kind: input, shape index: {}]   ;;  %s1387_s7 = inlined_call_operand.vmem [shape: f32[128,16], index: 7, kind: input, shape index: {}]   ;;  %s1388_s8 = inlined_call_operand.vmem [shape: f32[1,16], index: 8, kind: input, shape index: {}]   ;;  %s1389_s9 = inlined_call_operand.vmem [shape: f32[128,16], index: 9, kind: output, shape index: {}]  }
   0x1   :  { %s24_s11 = sshll.u32 %s1382_s2, 4  ;;  %s26_s13 = sshll.u32 %s985_s12, 4  ;;  %s25_s11 = int_to_ptr.hbm [resolvable:$true] %s24_s11  ;;  %s27_s13 = int_to_ptr.vmem [resolvable:$true] %s26_s13 }
   0x2   :  { %29 = dma.hbm_to_vmem [thread:$0]  %s25_s11, 16, %s27_s13, [#allocation3]  }
   0x3   :  { %983 = dma.done.wait [#allocation3], 16  }
   0x4   :  { %984 = vsyncadd [#allocation3], 4294967280  ;;  %v63_v0 = vld [vmem:[%s1381_s1 + $0x8] sm:$0xff]  ;;  %v62_v1 = vld [vmem:[%s1381_s1] sm:$0xff]  ;;  %vm68_vm0 = vcmask 130048  }
   0x5   :  { %131 = vmatpush.msra.mxu0 %v63_v0  ;;  %v46_v2 = vld [vmem:[%s1380_s0] sm:$0xff]  ;;  %v47_v3 = vld [vmem:[%s1380_s0 + $0x8] sm:$0xff]  ;;  %v48_v4 = vld [vmem:[%s1380_s0 + $0x10] sm:$0xff] }
   0x6   :  { %v49_v5 = vld [vmem:[%s1380_s0 + $0x18] sm:$0xff]  ;;  %v50_v6 = vld [vmem:[%s1380_s0 + $0x20] sm:$0xff]  ;;  %v51_v7 = vld [vmem:[%s1380_s0 + $0x28] sm:$0xff] }
   0x7   :  { %132 = vmatpush.msra.mxu0 %v62_v1  ;;  %v52_v8 = vld [vmem:[%s1380_s0 + $0x30] sm:$0xff]  ;;  %v53_v9 = vld [vmem:[%s1380_s0 + $0x38] sm:$0xff]  ;;  %v54_v10 = vld [vmem:[%s1380_s0 + $0x40] sm:$0xff] }
   0x8   :  { %794 = vmatmul.msk.f32.vlgmr.msra.gmra.mxu0 %vm68_vm0, %v46_v2  ;;  %v55_v11 = vld [vmem:[%s1380_s0 + $0x48] sm:$0xff]  ;;  %v56_v12 = vld [vmem:[%s1380_s0 + $0x50] sm:$0xff]  ;;  %v309_v13 = vld [vmem:[%s1383_s3 + $0x78] sm:$0xff] }
   0x9   :  { %v308_v14 = vld [vmem:[%s1383_s3 + $0x70] sm:$0xff]  ;;  %314 = vmatpush.msra.mxu1 %v309_v13  ;;  %v307_v15 = vld [vmem:[%s1383_s3 + $0x68] sm:$0xff]  ;;  %v306_v16 = vld [vmem:[%s1383_s3 + $0x60] sm:$0xff] }
   0xa   :  { %v57_v17 = vld [vmem:[%s1380_s0 + $0x58] sm:$0xff]  ;;  %v304_v19 = vld [vmem:[%s1383_s3 + $0x50] sm:$0xff]  ;;  %v303_v20 = vld [vmem:[%s1383_s3 + $0x48] sm:$0xff] }
   0xb   :  { %315 = vmatpush.msra.mxu1 %v308_v14  ;;  %v305_v18 = vld [vmem:[%s1383_s3 + $0x58] sm:$0xff]  ;;  %v58_v21 = vld [vmem:[%s1380_s0 + $0x60] sm:$0xff]  ;;  %v300_v24 = vld [vmem:[%s1383_s3 + $0x30] sm:$0xff] }
   0xc   :  { %v302_v22 = vld [vmem:[%s1383_s3 + $0x40] sm:$0xff]  ;;  %v301_v23 = vld [vmem:[%s1383_s3 + $0x38] sm:$0xff]  ;;  %v299_v25 = vld [vmem:[%s1383_s3 + $0x28] sm:$0xff] }
   0xd   :  { %316 = vmatpush.msra.mxu1 %v307_v15  ;;  %v59_v26 = vld [vmem:[%s1380_s0 + $0x68] sm:$0xff]  ;;  %v298_v27 = vld [vmem:[%s1383_s3 + $0x20] sm:$0xff]  ;;  %v297_v28 = vld [vmem:[%s1383_s3 + $0x18] sm:$0xff] }
   0xe   :  { %v296_v29 = vld [vmem:[%s1383_s3 + $0x10] sm:$0xff]  ;;  %v295_v30 = vld [vmem:[%s1383_s3 + $0x8] sm:$0xff]  ;;  %v294_v32 = vld [vmem:[%s1383_s3] sm:$0xff] }
   0xf   :  { %317 = vmatpush.msra.mxu1 %v306_v16  ;;  %v60_v31 = vld [vmem:[%s1380_s0 + $0x70] sm:$0xff]  ;;  %v61_v33 = vld [vmem:[%s1380_s0 + $0x78] sm:$0xff]  ;;  %v1157_v34 = vld [vmem:[#allocation2] ss:$0 sm:$0xff] }
  0x10   :  { %795 = vmatmul.msk.f32.gmra.mxu0 %vm68_vm0, %v47_v3 }
  0x11   :  { %318 = vmatpush.msra.mxu1 %v305_v18 }
  0x13   :  { %319 = vmatpush.msra.mxu1 %v304_v19 }
  0x15   :  { %320 = vmatpush.msra.mxu1 %v303_v20 }
  0x17   :  { %321 = vmatpush.msra.mxu1 %v302_v22 }
  0x18   :  { %796 = vmatmul.msk.f32.gmra.mxu0 %vm68_vm0, %v48_v4 }
  0x19   :  { %322 = vmatpush.msra.mxu1 %v301_v23 }
  0x1b   :  { %323 = vmatpush.msra.mxu1 %v300_v24 }
  0x1d   :  { %324 = vmatpush.msra.mxu1 %v299_v25 }
  0x1f   :  { %325 = vmatpush.msra.mxu1 %v298_v27 }
  0x20   :  { %797 = vmatmul.msk.f32.gmra.mxu0 %vm68_vm0, %v49_v5 }
  0x21   :  { %326 = vmatpush.msra.mxu1 %v297_v28 }
  0x23   :  { %327 = vmatpush.msra.mxu1 %v296_v29 }
  0x25   :  { %328 = vmatpush.msra.mxu1 %v295_v30 }
  0x27   :  { %329 = vmatpush.msra.mxu1 %v294_v32 }
  0x28   :  { %798 = vmatmul.msk.f32.gmra.mxu0 %vm68_vm0, %v50_v6 }
  0x30   :  { %799 = vmatmul.msk.f32.gmra.mxu0 %vm68_vm0, %v51_v7 }
  0x38   :  { %800 = vmatmul.msk.f32.gmra.mxu0 %vm68_vm0, %v52_v8 }
  0x40   :  { %801 = vmatmul.msk.f32.gmra.mxu0 %vm68_vm0, %v53_v9 }
  0x48   :  { %802 = vmatmul.msk.f32.gmra.mxu0 %vm68_vm0, %v54_v10 }
  0x50   :  { %803 = vmatmul.msk.f32.gmra.mxu0 %vm68_vm0, %v55_v11 }
  0x58   :  { %804 = vmatmul.msk.f32.gmra.mxu0 %vm68_vm0, %v56_v12 }
  0x60   :  { %805 = vmatmul.msk.f32.gmra.mxu0 %vm68_vm0, %v57_v17 }
  0x68   :  { %806 = vmatmul.msk.f32.gmra.mxu0 %vm68_vm0, %v58_v21 }
  0x70   :  { %807 = vmatmul.msk.f32.gmra.mxu0 %vm68_vm0, %v59_v26 }
  0x78   :  { %808 = vmatmul.msk.f32.gmra.mxu0 %vm68_vm0, %v60_v31 }
  0x80   :  { %809 = vmatmul.msk.f32.gmra.mxu0 %vm68_vm0, %v61_v33 }
  0x85   :  { %v134_v35 = vpop.f32.mrf.mxu0 }
  0x86   :  { %v135_v36 = vadd.f32 %v1157_v34, %v134_v35 }
  0x88   :  { %v182_v37 = vmin.f32 %v135_v36, 0.0  ;;  %vm262_vm1 = vcmp.gt.f32.partialorder %v135_v36, 0.0 }
  0x8a   :  { %v198_v38 = vmul.f32 1.442695, %v182_v37 }
  0x8c   :  { %863 = vpow2.f32 %v198_v38 }
  0x8d   :  { %v137_v39 = vpop.f32.mrf.mxu0 }
  0x8e   :  { %v138_v40 = vadd.f32 %v1157_v34, %v137_v39 }
  0x90   :  { %v183_v41 = vmin.f32 %v138_v40, 0.0  ;;  %vm263_vm2 = vcmp.gt.f32.partialorder %v138_v40, 0.0 }
  0x92   :  { %v864_v42 = vpop.eup %863  ;;  %v200_v43 = vmul.f32 1.442695, %v183_v41 }
  0x93   :  { %v810_v44 = vadd.f32 -1.0, %v864_v42 }
  0x94   :  { %865 = vpow2.f32 %v200_v43 }
  0x95   :  { %v140_v45 = vpop.f32.mrf.mxu0  ;;  %v246_v46 = vmul.f32 1.6732632, %v810_v44 }
  0x96   :  { %v141_v47 = vadd.f32 %v1157_v34, %v140_v45 }
  0x97   :  { %v278_v48 = vsel %vm262_vm1, %v135_v36, %v246_v46 }
  0x98   :  { %v184_v49 = vmin.f32 %v141_v47, 0.0  ;;  %330 = vmatmul.f32.vlgmr.msra.gmra.mxu1 %v278_v48  ;;  %vm264_vm3 = vcmp.gt.f32.partialorder %v141_v47, 0.0 }
  0x9a   :  { %v866_v50 = vpop.eup %865  ;;  %v202_v51 = vmul.f32 1.442695, %v184_v49 }
  0x9b   :  { %v811_v52 = vadd.f32 -1.0, %v866_v50 }
  0x9c   :  { %867 = vpow2.f32 %v202_v51 }
  0x9d   :  { %v143_v53 = vpop.f32.mrf.mxu0  ;;  %v247_v54 = vmul.f32 1.6732632, %v811_v52 }
  0x9e   :  { %v144_v55 = vadd.f32 %v1157_v34, %v143_v53 }
  0x9f   :  { %v279_v56 = vsel %vm263_vm2, %v138_v40, %v247_v54 }
  0xa0   :  { %v185_v57 = vmin.f32 %v144_v55, 0.0  ;;  %333 = vmatmul.f32.gmra.mxu1 %v279_v56  ;;  %vm265_vm4 = vcmp.gt.f32.partialorder %v144_v55, 0.0 }
  0xa2   :  { %v868_v58 = vpop.eup %867  ;;  %v204_v59 = vmul.f32 1.442695, %v185_v57 }
  0xa3   :  { %v812_v60 = vadd.f32 -1.0, %v868_v58 }
  0xa4   :  { %869 = vpow2.f32 %v204_v59 }
  0xa5   :  { %v146_v61 = vpop.f32.mrf.mxu0  ;;  %v248_v62 = vmul.f32 1.6732632, %v812_v60 }
  0xa6   :  { %v147_v63 = vadd.f32 %v1157_v34, %v146_v61 }
  0xa7   :  { %v280_v0 = vsel %vm264_vm3, %v141_v47, %v248_v62 }
  0xa8   :  { %v186_v1 = vmin.f32 %v147_v63, 0.0  ;;  %336 = vmatmul.f32.gmra.mxu1 %v280_v0  ;;  %vm266_vm5 = vcmp.gt.f32.partialorder %v147_v63, 0.0 }
  0xaa   :  { %v870_v2 = vpop.eup %869  ;;  %v206_v3 = vmul.f32 1.442695, %v186_v1 }
  0xab   :  { %v813_v4 = vadd.f32 -1.0, %v870_v2 }
  0xac   :  { %871 = vpow2.f32 %v206_v3  ;;  %v506_v3 = vld [vmem:[%s1385_s5 + $0x78] sm:$0xff] }
  0xad   :  { %v149_v5 = vpop.f32.mrf.mxu0  ;;  %v249_v6 = vmul.f32 1.6732632, %v813_v4  ;;  %v505_v4 = vld [vmem:[%s1385_s5 + $0x70] sm:$0xff]  ;;  %511 = vmatpush.msra.mxu2 %v506_v3 }
  0xae   :  { %v150_v7 = vadd.f32 %v1157_v34, %v149_v5 }
  0xaf   :  { %v281_v8 = vsel %vm265_vm4, %v144_v55, %v249_v6  ;;  %512 = vmatpush.msra.mxu2 %v505_v4 }
  0xb0   :  { %v187_v9 = vmin.f32 %v150_v7, 0.0  ;;  %339 = vmatmul.f32.gmra.mxu1 %v281_v8  ;;  %vm267_vm6 = vcmp.gt.f32.partialorder %v150_v7, 0.0 }
  0xb2   :  { %v872_v10 = vpop.eup %871  ;;  %v208_v11 = vmul.f32 1.442695, %v187_v9  ;;  %v503_v9 = vld [vmem:[%s1385_s5 + $0x60] sm:$0xff] }
  0xb3   :  { %v814_v12 = vadd.f32 -1.0, %v872_v10 }
  0xb4   :  { %873 = vpow2.f32 %v208_v11 }
  0xb5   :  { %v152_v13 = vpop.f32.mrf.mxu0  ;;  %v250_v14 = vmul.f32 1.6732632, %v814_v12 }
  0xb6   :  { %v153_v15 = vadd.f32 %v1157_v34, %v152_v13 }
  0xb7   :  { %v282_v16 = vsel %vm266_vm5, %v147_v63, %v250_v14 }
  0xb8   :  { %v188_v17 = vmin.f32 %v153_v15, 0.0  ;;  %342 = vmatmul.f32.gmra.mxu1 %v282_v16  ;;  %vm268_vm7 = vcmp.gt.f32.partialorder %v153_v15, 0.0  ;;  %v501_v16 = vld [vmem:[%s1385_s5 + $0x50] sm:$0xff] }
  0xba   :  { %v874_v18 = vpop.eup %873  ;;  %v210_v19 = vmul.f32 1.442695, %v188_v17 }
  0xbb   :  { %v815_v20 = vadd.f32 -1.0, %v874_v18 }
  0xbc   :  { %875 = vpow2.f32 %v210_v19 }
  0xbd   :  { %v155_v21 = vpop.f32.mrf.mxu0  ;;  %v251_v22 = vmul.f32 1.6732632, %v815_v20  ;;  %v500_v20 = vld [vmem:[%s1385_s5 + $0x48] sm:$0xff] }
  0xbe   :  { %v156_v23 = vadd.f32 %v1157_v34, %v155_v21 }
  0xbf   :  { %v283_v24 = vsel %vm267_vm6, %v150_v7, %v251_v22  ;;  %v504_v7 = vld [vmem:[%s1385_s5 + $0x68] sm:$0xff] }
  0xc0   :  { %v189_v25 = vmin.f32 %v156_v23, 0.0  ;;  %345 = vmatmul.f32.gmra.mxu1 %v283_v24  ;;  %vm269_vm8 = vcmp.gt.f32.partialorder %v156_v23, 0.0  ;;  %513 = vmatpush.msra.mxu2 %v504_v7  ;;  %v499_v24 = vld [vmem:[%s1385_s5 + $0x40] sm:$0xff] }
  0xc2   :  { %v876_v26 = vpop.eup %875  ;;  %v212_v27 = vmul.f32 1.442695, %v189_v25  ;;  %514 = vmatpush.msra.mxu2 %v503_v9 }
  0xc3   :  { %v816_v28 = vadd.f32 -1.0, %v876_v26 }
  0xc4   :  { %877 = vpow2.f32 %v212_v27  ;;  %v498_v27 = vld [vmem:[%s1385_s5 + $0x38] sm:$0xff] }
  0xc5   :  { %v158_v29 = vpop.f32.mrf.mxu0  ;;  %v252_v30 = vmul.f32 1.6732632, %v816_v28 }
  0xc6   :  { %v159_v31 = vadd.f32 %v1157_v34, %v158_v29 }
  0xc7   :  { %v284_v32 = vsel %vm268_vm7, %v153_v15, %v252_v30  ;;  %v502_v15 = vld [vmem:[%s1385_s5 + $0x58] sm:$0xff]  ;;  %v497_v30 = vld [vmem:[%s1385_s5 + $0x30] sm:$0xff] }
  0xc8   :  { %v190_v33 = vmin.f32 %v159_v31, 0.0  ;;  %348 = vmatmul.f32.gmra.mxu1 %v284_v32  ;;  %vm270_vm9 = vcmp.gt.f32.partialorder %v159_v31, 0.0  ;;  %515 = vmatpush.msra.mxu2 %v502_v15  ;;  %v496_v32 = vld [vmem:[%s1385_s5 + $0x28] sm:$0xff] }
  0xca   :  { %v878_v35 = vpop.eup %877  ;;  %v214_v36 = vmul.f32 1.442695, %v190_v33  ;;  %516 = vmatpush.msra.mxu2 %v501_v16 }
  0xcb   :  { %v817_v37 = vadd.f32 -1.0, %v878_v35 }
  0xcc   :  { %879 = vpow2.f32 %v214_v36  ;;  %517 = vmatpush.msra.mxu2 %v500_v20 }
  0xcd   :  { %v161_v38 = vpop.f32.mrf.mxu0  ;;  %v253_v39 = vmul.f32 1.6732632, %v817_v37  ;;  %v495_v37 = vld [vmem:[%s1385_s5 + $0x20] sm:$0xff] }
  0xce   :  { %v162_v40 = vadd.f32 %v1157_v34, %v161_v38  ;;  %518 = vmatpush.msra.mxu2 %v499_v24 }
  0xcf   :  { %v285_v41 = vsel %vm269_vm8, %v156_v23, %v253_v39 }
  0xd0   :  { %v191_v42 = vmin.f32 %v162_v40, 0.0  ;;  %351 = vmatmul.f32.gmra.mxu1 %v285_v41  ;;  %vm271_vm10 = vcmp.gt.f32.partialorder %v162_v40, 0.0  ;;  %519 = vmatpush.msra.mxu2 %v498_v27 }
  0xd2   :  { %v880_v43 = vpop.eup %879  ;;  %v216_v44 = vmul.f32 1.442695, %v191_v42  ;;  %520 = vmatpush.msra.mxu2 %v497_v30 }
  0xd3   :  { %v818_v45 = vadd.f32 -1.0, %v880_v43 }
  0xd4   :  { %881 = vpow2.f32 %v216_v44  ;;  %521 = vmatpush.msra.mxu2 %v496_v32  ;;  %v492_v44 = vld [vmem:[%s1385_s5 + $0x8] sm:$0xff] }
  0xd5   :  { %v164_v46 = vpop.f32.mrf.mxu0  ;;  %v254_v47 = vmul.f32 1.6732632, %v818_v45 }
  0xd6   :  { %v165_v48 = vadd.f32 %v1157_v34, %v164_v46  ;;  %522 = vmatpush.msra.mxu2 %v495_v37  ;;  %v491_v46 = vld [vmem:[%s1385_s5] sm:$0xff] }
  0xd7   :  { %v286_v49 = vsel %vm270_vm9, %v159_v31, %v254_v47 }
  0xd8   :  { %v192_v50 = vmin.f32 %v165_v48, 0.0  ;;  %354 = vmatmul.f32.gmra.mxu1 %v286_v49  ;;  %vm272_vm11 = vcmp.gt.f32.partialorder %v165_v48, 0.0 }
  0xda   :  { %v882_v51 = vpop.eup %881  ;;  %v218_v52 = vmul.f32 1.442695, %v192_v50 }
  0xdb   :  { %v819_v53 = vadd.f32 -1.0, %v882_v51 }
  0xdc   :  { %883 = vpow2.f32 %v218_v52  ;;  %v1226_v52 = vld [vmem:[%s1384_s4] ss:$0 sm:$0xff] }
  0xdd   :  { %v167_v54 = vpop.f32.mrf.mxu0  ;;  %v255_v55 = vmul.f32 1.6732632, %v819_v53 }
  0xde   :  { %v168_v56 = vadd.f32 %v1157_v34, %v167_v54 }
  0xdf   :  { %v287_v57 = vsel %vm271_vm10, %v162_v40, %v255_v55  ;;  %v494_v40 = vld [vmem:[%s1385_s5 + $0x18] sm:$0xff] }
  0xe0   :  { %v193_v58 = vmin.f32 %v168_v56, 0.0  ;;  %357 = vmatmul.f32.gmra.mxu1 %v287_v57  ;;  %vm273_vm12 = vcmp.gt.f32.partialorder %v168_v56, 0.0  ;;  %523 = vmatpush.msra.mxu2 %v494_v40 }
  0xe2   :  { %v884_v59 = vpop.eup %883  ;;  %v220_v60 = vmul.f32 1.442695, %v193_v58 }
  0xe3   :  { %v820_v61 = vadd.f32 -1.0, %v884_v59 }
  0xe4   :  { %885 = vpow2.f32 %v220_v60 }
  0xe5   :  { %v170_v62 = vpop.f32.mrf.mxu0  ;;  %v256_v63 = vmul.f32 1.6732632, %v820_v61 }
  0xe6   :  { %v171_v0 = vadd.f32 %v1157_v34, %v170_v62 }
  0xe7   :  { %v288_v1 = vsel %vm272_vm11, %v165_v48, %v256_v63 }
  0xe8   :  { %v194_v2 = vmin.f32 %v171_v0, 0.0  ;;  %360 = vmatmul.f32.gmra.mxu1 %v288_v1  ;;  %vm274_vm13 = vcmp.gt.f32.partialorder %v171_v0, 0.0 }
  0xea   :  { %v886_v5 = vpop.eup %885  ;;  %v222_v6 = vmul.f32 1.442695, %v194_v2 }
  0xeb   :  { %v821_v8 = vadd.f32 -1.0, %v886_v5 }
  0xec   :  { %887 = vpow2.f32 %v222_v6 }
  0xed   :  { %v173_v10 = vpop.f32.mrf.mxu0  ;;  %v257_v11 = vmul.f32 1.6732632, %v821_v8 }
  0xee   :  { %v174_v12 = vadd.f32 %v1157_v34, %v173_v10 }
  0xef   :  { %v289_v13 = vsel %vm273_vm12, %v168_v56, %v257_v11 }
  0xf0   :  { %v195_v14 = vmin.f32 %v174_v12, 0.0  ;;  %363 = vmatmul.f32.gmra.mxu1 %v289_v13  ;;  %vm275_vm14 = vcmp.gt.f32.partialorder %v174_v12, 0.0 }
  0xf2   :  { %v888_v17 = vpop.eup %887  ;;  %v224_v18 = vmul.f32 1.442695, %v195_v14 }
  0xf3   :  { %v822_v19 = vadd.f32 -1.0, %v888_v17 }
  0xf4   :  { %889 = vpow2.f32 %v224_v18 }
  0xf5   :  { %v176_v21 = vpop.f32.mrf.mxu0  ;;  %v258_v22 = vmul.f32 1.6732632, %v822_v19 }
  0xf6   :  { %v177_v23 = vadd.f32 %v1157_v34, %v176_v21 }
  0xf7   :  { %v290_v25 = vsel %vm274_vm13, %v171_v0, %v258_v22 }
  0xf8   :  { %v196_v26 = vmin.f32 %v177_v23, 0.0  ;;  %366 = vmatmul.f32.gmra.mxu1 %v290_v25  ;;  %vm276_vm15 = vcmp.gt.f32.partialorder %v177_v23, 0.0 }
  0xfa   :  { %v890_v28 = vpop.eup %889  ;;  %v226_v29 = vmul.f32 1.442695, %v196_v26 }
  0xfb   :  { %v823_v31 = vadd.f32 -1.0, %v890_v28 }
  0xfc   :  { %891 = vpow2.f32 %v226_v29 }
  0xfd   :  { %v179_v33 = vpop.f32.mrf.mxu0  ;;  %v259_v35 = vmul.f32 1.6732632, %v823_v31 }
  0xfe   :  { %v180_v36 = vadd.f32 %v1157_v34, %v179_v33  ;;  %v493_v34 = vld [vmem:[%s1385_s5 + $0x10] sm:$0xff] }
  0xff   :  { %v291_v38 = vsel %vm275_vm14, %v174_v12, %v259_v35  ;;  %524 = vmatpush.msra.mxu2 %v493_v34 }
 0x100   :  { %v197_v39 = vmin.f32 %v180_v36, 0.0  ;;  %369 = vmatmul.f32.gmra.mxu1 %v291_v38  ;;  %vm277_vm1 = vcmp.gt.f32.partialorder %v180_v36, 0.0 }
 0x101   :  { %525 = vmatpush.msra.mxu2 %v492_v44 }
 0x102   :  { %v892_v41 = vpop.eup %891  ;;  %v228_v42 = vmul.f32 1.442695, %v197_v39 }
 0x103   :  { %v824_v43 = vadd.f32 -1.0, %v892_v41  ;;  %526 = vmatpush.msra.mxu2 %v491_v46 }
 0x104   :  { %893 = vpow2.f32 %v228_v42 }
 0x105   :  { %v260_v45 = vmul.f32 1.6732632, %v824_v43 }
 0x107   :  { %v292_v47 = vsel %vm276_vm15, %v177_v23, %v260_v45 }
 0x108   :  { %372 = vmatmul.f32.gmra.mxu1 %v292_v47 }
 0x10a   :  { %v894_v48 = vpop.eup %893 }
 0x10b   :  { %v825_v49 = vadd.f32 -1.0, %v894_v48 }
 0x10d   :  { %v261_v50 = vmul.f32 1.6732632, %v825_v49 }
 0x10f   :  { %v293_v51 = vsel %vm277_vm1, %v180_v36, %v261_v50 }
 0x110   :  { %375 = vmatmul.f32.gmra.mxu1 %v293_v51 }
 0x115   :  { %v331_v53 = vpop.f32.mrf.mxu1 }
 0x116   :  { %v332_v54 = vadd.f32 %v1226_v52, %v331_v53 }
 0x118   :  { %v379_v55 = vmin.f32 %v332_v54, 0.0  ;;  %vm459_vm2 = vcmp.gt.f32.partialorder %v332_v54, 0.0 }
 0x11a   :  { %v395_v56 = vmul.f32 1.442695, %v379_v55 }
 0x11c   :  { %895 = vpow2.f32 %v395_v56 }
 0x11d   :  { %v334_v57 = vpop.f32.mrf.mxu1 }
 0x11e   :  { %v335_v58 = vadd.f32 %v1226_v52, %v334_v57 }
 0x120   :  { %v380_v59 = vmin.f32 %v335_v58, 0.0  ;;  %vm460_vm3 = vcmp.gt.f32.partialorder %v335_v58, 0.0 }
 0x122   :  { %v896_v60 = vpop.eup %895  ;;  %v397_v61 = vmul.f32 1.442695, %v380_v59 }
 0x123   :  { %v826_v62 = vadd.f32 -1.0, %v896_v60 }
 0x124   :  { %897 = vpow2.f32 %v397_v61 }
 0x125   :  { %v337_v63 = vpop.f32.mrf.mxu1  ;;  %v443_v0 = vmul.f32 1.6732632, %v826_v62 }
 0x126   :  { %v338_v1 = vadd.f32 %v1226_v52, %v337_v63 }
 0x127   :  { %v475_v2 = vsel %vm459_vm2, %v332_v54, %v443_v0 }
 0x128   :  { %v381_v3 = vmin.f32 %v338_v1, 0.0  ;;  %527 = vmatmul.f32.vlgmr.msra.gmra.mxu2 %v475_v2  ;;  %vm461_vm4 = vcmp.gt.f32.partialorder %v338_v1, 0.0 }
 0x12a   :  { %v898_v4 = vpop.eup %897  ;;  %v399_v5 = vmul.f32 1.442695, %v381_v3 }
 0x12b   :  { %v827_v6 = vadd.f32 -1.0, %v898_v4 }
 0x12c   :  { %899 = vpow2.f32 %v399_v5 }
 0x12d   :  { %v340_v7 = vpop.f32.mrf.mxu1  ;;  %v444_v8 = vmul.f32 1.6732632, %v827_v6 }
 0x12e   :  { %v341_v9 = vadd.f32 %v1226_v52, %v340_v7 }
 0x12f   :  { %v476_v10 = vsel %vm460_vm3, %v335_v58, %v444_v8 }
 0x130   :  { %v382_v11 = vmin.f32 %v341_v9, 0.0  ;;  %530 = vmatmul.f32.gmra.mxu2 %v476_v10  ;;  %vm462_vm5 = vcmp.gt.f32.partialorder %v341_v9, 0.0 }
 0x132   :  { %v900_v12 = vpop.eup %899  ;;  %v401_v13 = vmul.f32 1.442695, %v382_v11 }
 0x133   :  { %v828_v14 = vadd.f32 -1.0, %v900_v12 }
 0x134   :  { %901 = vpow2.f32 %v401_v13 }
 0x135   :  { %v343_v15 = vpop.f32.mrf.mxu1  ;;  %v445_v16 = vmul.f32 1.6732632, %v828_v14 }
 0x136   :  { %v344_v17 = vadd.f32 %v1226_v52, %v343_v15 }
 0x137   :  { %v477_v18 = vsel %vm461_vm4, %v338_v1, %v445_v16 }
 0x138   :  { %v383_v19 = vmin.f32 %v344_v17, 0.0  ;;  %533 = vmatmul.f32.gmra.mxu2 %v477_v18  ;;  %vm463_vm6 = vcmp.gt.f32.partialorder %v344_v17, 0.0 }
 0x13a   :  { %v902_v20 = vpop.eup %901  ;;  %v403_v21 = vmul.f32 1.442695, %v383_v19 }
 0x13b   :  { %v829_v22 = vadd.f32 -1.0, %v902_v20 }
 0x13c   :  { %903 = vpow2.f32 %v403_v21  ;;  %v703_v21 = vld [vmem:[%s1387_s7 + $0x78] sm:$0xff] }
 0x13d   :  { %v346_v23 = vpop.f32.mrf.mxu1  ;;  %v446_v24 = vmul.f32 1.6732632, %v829_v22  ;;  %708 = vmatpush.msra.mxu3 %v703_v21 }
 0x13e   :  { %v347_v25 = vadd.f32 %v1226_v52, %v346_v23 }
 0x13f   :  { %v478_v26 = vsel %vm462_vm5, %v341_v9, %v446_v24 }
 0x140   :  { %v384_v27 = vmin.f32 %v347_v25, 0.0  ;;  %536 = vmatmul.f32.gmra.mxu2 %v478_v26  ;;  %vm464_vm7 = vcmp.gt.f32.partialorder %v347_v25, 0.0 }
 0x142   :  { %v904_v28 = vpop.eup %903  ;;  %v405_v29 = vmul.f32 1.442695, %v384_v27 }
 0x143   :  { %v830_v30 = vadd.f32 -1.0, %v904_v28 }
 0x144   :  { %905 = vpow2.f32 %v405_v29 }
 0x145   :  { %v349_v31 = vpop.f32.mrf.mxu1  ;;  %v447_v32 = vmul.f32 1.6732632, %v830_v30  ;;  %v702_v30 = vld [vmem:[%s1387_s7 + $0x70] sm:$0xff] }
 0x146   :  { %v350_v33 = vadd.f32 %v1226_v52, %v349_v31  ;;  %v701_v31 = vld [vmem:[%s1387_s7 + $0x68] sm:$0xff]  ;;  %709 = vmatpush.msra.mxu3 %v702_v30 }
 0x147   :  { %v479_v35 = vsel %vm463_vm6, %v344_v17, %v447_v32 }
 0x148   :  { %v385_v36 = vmin.f32 %v350_v33, 0.0  ;;  %539 = vmatmul.f32.gmra.mxu2 %v479_v35  ;;  %vm465_vm8 = vcmp.gt.f32.partialorder %v350_v33, 0.0  ;;  %v700_v35 = vld [vmem:[%s1387_s7 + $0x60] sm:$0xff]  ;;  %710 = vmatpush.msra.mxu3 %v701_v31 }
 0x14a   :  { %v906_v37 = vpop.eup %905  ;;  %v407_v38 = vmul.f32 1.442695, %v385_v36  ;;  %711 = vmatpush.msra.mxu3 %v700_v35 }
 0x14b   :  { %v831_v39 = vadd.f32 -1.0, %v906_v37  ;;  %v699_v37 = vld [vmem:[%s1387_s7 + $0x58] sm:$0xff] }
 0x14c   :  { %907 = vpow2.f32 %v407_v38  ;;  %712 = vmatpush.msra.mxu3 %v699_v37 }
 0x14d   :  { %v352_v40 = vpop.f32.mrf.mxu1  ;;  %v448_v41 = vmul.f32 1.6732632, %v831_v39 }
 0x14e   :  { %v353_v42 = vadd.f32 %v1226_v52, %v352_v40 }
 0x14f   :  { %v480_v34 = vsel %vm464_vm7, %v347_v25, %v448_v41  ;;  %v698_v41 = vld [vmem:[%s1387_s7 + $0x50] sm:$0xff] }
 0x150   :  { %v386_v43 = vmin.f32 %v353_v42, 0.0  ;;  %542 = vmatmul.f32.gmra.mxu2 %v480_v34  ;;  %vm466_vm9 = vcmp.gt.f32.partialorder %v353_v42, 0.0  ;;  %713 = vmatpush.msra.mxu3 %v698_v41 }
 0x152   :  { %v908_v44 = vpop.eup %907  ;;  %v409_v45 = vmul.f32 1.442695, %v386_v43 }
 0x153   :  { %v832_v46 = vadd.f32 -1.0, %v908_v44 }
 0x154   :  { %909 = vpow2.f32 %v409_v45  ;;  %v697_v45 = vld [vmem:[%s1387_s7 + $0x48] sm:$0xff] }
 0x155   :  { %v355_v47 = vpop.f32.mrf.mxu1  ;;  %v449_v48 = vmul.f32 1.6732632, %v832_v46  ;;  %714 = vmatpush.msra.mxu3 %v697_v45 }
 0x156   :  { %v356_v49 = vadd.f32 %v1226_v52, %v355_v47  ;;  %v696_v47 = vld [vmem:[%s1387_s7 + $0x40] sm:$0xff] }
 0x157   :  { %v481_v50 = vsel %vm465_vm8, %v350_v33, %v449_v48  ;;  %715 = vmatpush.msra.mxu3 %v696_v47 }
 0x158   :  { %v387_v51 = vmin.f32 %v356_v49, 0.0  ;;  %545 = vmatmul.f32.gmra.mxu2 %v481_v50  ;;  %vm467_vm10 = vcmp.gt.f32.partialorder %v356_v49, 0.0 }
 0x15a   :  { %v910_v53 = vpop.eup %909  ;;  %v411_v54 = vmul.f32 1.442695, %v387_v51  ;;  %v695_v51 = vld [vmem:[%s1387_s7 + $0x38] sm:$0xff] }
 0x15b   :  { %v833_v55 = vadd.f32 -1.0, %v910_v53  ;;  %716 = vmatpush.msra.mxu3 %v695_v51 }
 0x15c   :  { %911 = vpow2.f32 %v411_v54 }
 0x15d   :  { %v358_v56 = vpop.f32.mrf.mxu1  ;;  %v450_v57 = vmul.f32 1.6732632, %v833_v55  ;;  %v694_v55 = vld [vmem:[%s1387_s7 + $0x30] sm:$0xff] }
 0x15e   :  { %v359_v58 = vadd.f32 %v1226_v52, %v358_v56  ;;  %717 = vmatpush.msra.mxu3 %v694_v55 }
 0x15f   :  { %v482_v59 = vsel %vm466_vm9, %v353_v42, %v450_v57 }
 0x160   :  { %v388_v60 = vmin.f32 %v359_v58, 0.0  ;;  %548 = vmatmul.f32.gmra.mxu2 %v482_v59  ;;  %vm468_vm11 = vcmp.gt.f32.partialorder %v359_v58, 0.0  ;;  %v692_v59 = vld [vmem:[%s1387_s7 + $0x20] sm:$0xff] }
 0x162   :  { %v912_v61 = vpop.eup %911  ;;  %v413_v62 = vmul.f32 1.442695, %v388_v60 }
 0x163   :  { %v834_v63 = vadd.f32 -1.0, %v912_v61  ;;  %v691_v61 = vld [vmem:[%s1387_s7 + $0x18] sm:$0xff] }
 0x164   :  { %913 = vpow2.f32 %v413_v62 }
 0x165   :  { %v361_v0 = vpop.f32.mrf.mxu1  ;;  %v451_v1 = vmul.f32 1.6732632, %v834_v63  ;;  %v690_v63 = vld [vmem:[%s1387_s7 + $0x10] sm:$0xff] }
 0x166   :  { %v362_v2 = vadd.f32 %v1226_v52, %v361_v0 }
 0x167   :  { %v483_v3 = vsel %vm467_vm10, %v356_v49, %v451_v1  ;;  %v689_v1 = vld [vmem:[%s1387_s7 + $0x8] sm:$0xff] }
 0x168   :  { %v389_v4 = vmin.f32 %v362_v2, 0.0  ;;  %551 = vmatmul.f32.gmra.mxu2 %v483_v3  ;;  %vm469_vm12 = vcmp.gt.f32.partialorder %v362_v2, 0.0  ;;  %v688_v3 = vld [vmem:[%s1387_s7] sm:$0xff] }
 0x16a   :  { %v914_v5 = vpop.eup %913  ;;  %v415_v6 = vmul.f32 1.442695, %v389_v4 }
 0x16b   :  { %v835_v7 = vadd.f32 -1.0, %v914_v5 }
 0x16c   :  { %915 = vpow2.f32 %v415_v6  ;;  %v1295_v6 = vld [vmem:[%s1386_s6] ss:$0 sm:$0xff] }
 0x16d   :  { %v364_v8 = vpop.f32.mrf.mxu1  ;;  %v452_v9 = vmul.f32 1.6732632, %v835_v7 }
 0x16e   :  { %v365_v10 = vadd.f32 %v1226_v52, %v364_v8 }
 0x16f   :  { %v484_v11 = vsel %vm468_vm11, %v359_v58, %v452_v9 }
 0x170   :  { %v390_v12 = vmin.f32 %v365_v10, 0.0  ;;  %554 = vmatmul.f32.gmra.mxu2 %v484_v11  ;;  %vm470_vm13 = vcmp.gt.f32.partialorder %v365_v10, 0.0 }
 0x172   :  { %v916_v13 = vpop.eup %915  ;;  %v417_v14 = vmul.f32 1.442695, %v390_v12 }
 0x173   :  { %v836_v15 = vadd.f32 -1.0, %v916_v13 }
 0x174   :  { %917 = vpow2.f32 %v417_v14 }
 0x175   :  { %v367_v16 = vpop.f32.mrf.mxu1  ;;  %v453_v17 = vmul.f32 1.6732632, %v836_v15 }
 0x176   :  { %v368_v18 = vadd.f32 %v1226_v52, %v367_v16 }
 0x177   :  { %v485_v19 = vsel %vm469_vm12, %v362_v2, %v453_v17 }
 0x178   :  { %v391_v20 = vmin.f32 %v368_v18, 0.0  ;;  %557 = vmatmul.f32.gmra.mxu2 %v485_v19  ;;  %vm471_vm14 = vcmp.gt.f32.partialorder %v368_v18, 0.0 }
 0x17a   :  { %v918_v22 = vpop.eup %917  ;;  %v419_v23 = vmul.f32 1.442695, %v391_v20 }
 0x17b   :  { %v837_v24 = vadd.f32 -1.0, %v918_v22 }
 0x17c   :  { %919 = vpow2.f32 %v419_v23 }
 0x17d   :  { %v370_v25 = vpop.f32.mrf.mxu1  ;;  %v454_v26 = vmul.f32 1.6732632, %v837_v24 }
 0x17e   :  { %v371_v27 = vadd.f32 %v1226_v52, %v370_v25 }
 0x17f   :  { %v486_v28 = vsel %vm470_vm13, %v365_v10, %v454_v26 }
 0x180   :  { %v392_v29 = vmin.f32 %v371_v27, 0.0  ;;  %560 = vmatmul.f32.gmra.mxu2 %v486_v28  ;;  %vm472_vm15 = vcmp.gt.f32.partialorder %v371_v27, 0.0 }
 0x182   :  { %v920_v32 = vpop.eup %919  ;;  %v421_v33 = vmul.f32 1.442695, %v392_v29 }
 0x183   :  { %v838_v36 = vadd.f32 -1.0, %v920_v32 }
 0x184   :  { %921 = vpow2.f32 %v421_v33 }
 0x185   :  { %v373_v38 = vpop.f32.mrf.mxu1  ;;  %v455_v39 = vmul.f32 1.6732632, %v838_v36 }
 0x186   :  { %v374_v40 = vadd.f32 %v1226_v52, %v373_v38 }
 0x187   :  { %v487_v42 = vsel %vm471_vm14, %v368_v18, %v455_v39 }
 0x188   :  { %v393_v34 = vmin.f32 %v374_v40, 0.0  ;;  %563 = vmatmul.f32.gmra.mxu2 %v487_v42  ;;  %vm473_vm1 = vcmp.gt.f32.partialorder %v374_v40, 0.0 }
 0x18a   :  { %v922_v43 = vpop.eup %921  ;;  %v423_v44 = vmul.f32 1.442695, %v393_v34 }
 0x18b   :  { %v839_v46 = vadd.f32 -1.0, %v922_v43 }
 0x18c   :  { %923 = vpow2.f32 %v423_v44 }
 0x18d   :  { %v376_v48 = vpop.f32.mrf.mxu1  ;;  %v456_v49 = vmul.f32 1.6732632, %v839_v46 }
 0x18e   :  { %v377_v50 = vadd.f32 %v1226_v52, %v376_v48  ;;  %v693_v52 = vld [vmem:[%s1387_s7 + $0x28] sm:$0xff] }
 0x18f   :  { %v488_v53 = vsel %vm472_vm15, %v371_v27, %v456_v49  ;;  %718 = vmatpush.msra.mxu3 %v693_v52 }
 0x190   :  { %v394_v54 = vmin.f32 %v377_v50, 0.0  ;;  %566 = vmatmul.f32.gmra.mxu2 %v488_v53  ;;  %vm474_vm2 = vcmp.gt.f32.partialorder %v377_v50, 0.0 }
 0x191   :  { %719 = vmatpush.msra.mxu3 %v692_v59 }
 0x192   :  { %v924_v56 = vpop.eup %923  ;;  %v425_v57 = vmul.f32 1.442695, %v394_v54 }
 0x193   :  { %v840_v58 = vadd.f32 -1.0, %v924_v56  ;;  %720 = vmatpush.msra.mxu3 %v691_v61 }
 0x194   :  { %925 = vpow2.f32 %v425_v57 }
 0x195   :  { %v457_v60 = vmul.f32 1.6732632, %v840_v58  ;;  %721 = vmatpush.msra.mxu3 %v690_v63 }
 0x197   :  { %v489_v62 = vsel %vm473_vm1, %v374_v40, %v457_v60  ;;  %722 = vmatpush.msra.mxu3 %v689_v1 }
 0x198   :  { %569 = vmatmul.f32.gmra.mxu2 %v489_v62 }
 0x199   :  { %723 = vmatpush.msra.mxu3 %v688_v3 }
 0x19a   :  { %v926_v0 = vpop.eup %925 }
 0x19b   :  { %v841_v2 = vadd.f32 -1.0, %v926_v0 }
 0x19d   :  { %v458_v4 = vmul.f32 1.6732632, %v841_v2 }
 0x19f   :  { %v490_v5 = vsel %vm474_vm2, %v377_v50, %v458_v4 }
 0x1a0   :  { %572 = vmatmul.f32.gmra.mxu2 %v490_v5 }
 0x1ab   :  { %v528_v7 = vpop.f32.mrf.mxu2 }
 0x1ac   :  { %v529_v8 = vadd.f32 %v1295_v6, %v528_v7 }
 0x1ae   :  { %v576_v9 = vmin.f32 %v529_v8, 0.0  ;;  %vm656_vm3 = vcmp.gt.f32.partialorder %v529_v8, 0.0 }
 0x1b0   :  { %v592_v10 = vmul.f32 1.442695, %v576_v9 }
 0x1b2   :  { %927 = vpow2.f32 %v592_v10 }
 0x1b3   :  { %v531_v11 = vpop.f32.mrf.mxu2 }
 0x1b4   :  { %v532_v12 = vadd.f32 %v1295_v6, %v531_v11 }
 0x1b6   :  { %v577_v13 = vmin.f32 %v532_v12, 0.0  ;;  %vm657_vm4 = vcmp.gt.f32.partialorder %v532_v12, 0.0 }
 0x1b8   :  { %v928_v14 = vpop.eup %927  ;;  %v594_v15 = vmul.f32 1.442695, %v577_v13 }
 0x1b9   :  { %v842_v16 = vadd.f32 -1.0, %v928_v14 }
 0x1ba   :  { %929 = vpow2.f32 %v594_v15 }
 0x1bb   :  { %v534_v17 = vpop.f32.mrf.mxu2  ;;  %v640_v18 = vmul.f32 1.6732632, %v842_v16 }
 0x1bc   :  { %v535_v19 = vadd.f32 %v1295_v6, %v534_v17 }
 0x1bd   :  { %v672_v20 = vsel %vm656_vm3, %v529_v8, %v640_v18 }
 0x1be   :  { %v578_v21 = vmin.f32 %v535_v19, 0.0  ;;  %724 = vmatmul.f32.vlgmr.msra.gmra.mxu3 %v672_v20  ;;  %vm658_vm5 = vcmp.gt.f32.partialorder %v535_v19, 0.0 }
 0x1c0   :  { %v930_v22 = vpop.eup %929  ;;  %v596_v23 = vmul.f32 1.442695, %v578_v21 }
 0x1c1   :  { %v843_v24 = vadd.f32 -1.0, %v930_v22 }
 0x1c2   :  { %931 = vpow2.f32 %v596_v23 }
 0x1c3   :  { %v537_v25 = vpop.f32.mrf.mxu2  ;;  %v641_v26 = vmul.f32 1.6732632, %v843_v24 }
 0x1c4   :  { %v538_v27 = vadd.f32 %v1295_v6, %v537_v25 }
 0x1c5   :  { %v673_v28 = vsel %vm657_vm4, %v532_v12, %v641_v26 }
 0x1c6   :  { %v579_v29 = vmin.f32 %v538_v27, 0.0  ;;  %727 = vmatmul.f32.gmra.mxu3 %v673_v28  ;;  %vm659_vm6 = vcmp.gt.f32.partialorder %v538_v27, 0.0 }
 0x1c8   :  { %v932_v30 = vpop.eup %931  ;;  %v598_v31 = vmul.f32 1.442695, %v579_v29 }
 0x1c9   :  { %v844_v32 = vadd.f32 -1.0, %v932_v30 }
 0x1ca   :  { %933 = vpow2.f32 %v598_v31 }
 0x1cb   :  { %v540_v33 = vpop.f32.mrf.mxu2  ;;  %v642_v35 = vmul.f32 1.6732632, %v844_v32 }
 0x1cc   :  { %v541_v36 = vadd.f32 %v1295_v6, %v540_v33 }
 0x1cd   :  { %v674_v37 = vsel %vm658_vm5, %v535_v19, %v642_v35 }
 0x1ce   :  { %v580_v38 = vmin.f32 %v541_v36, 0.0  ;;  %730 = vmatmul.f32.gmra.mxu3 %v674_v37  ;;  %vm660_vm7 = vcmp.gt.f32.partialorder %v541_v36, 0.0 }
 0x1d0   :  { %v934_v39 = vpop.eup %933  ;;  %v600_v40 = vmul.f32 1.442695, %v580_v38 }
 0x1d1   :  { %v845_v41 = vadd.f32 -1.0, %v934_v39 }
 0x1d2   :  { %935 = vpow2.f32 %v600_v40 }
 0x1d3   :  { %v543_v42 = vpop.f32.mrf.mxu2  ;;  %v643_v34 = vmul.f32 1.6732632, %v845_v41 }
 0x1d4   :  { %v544_v43 = vadd.f32 %v1295_v6, %v543_v42 }
 0x1d5   :  { %v675_v44 = vsel %vm659_vm6, %v538_v27, %v643_v34 }
 0x1d6   :  { %v581_v45 = vmin.f32 %v544_v43, 0.0  ;;  %733 = vmatmul.f32.gmra.mxu3 %v675_v44  ;;  %vm661_vm8 = vcmp.gt.f32.partialorder %v544_v43, 0.0 }
 0x1d8   :  { %v936_v46 = vpop.eup %935  ;;  %v602_v47 = vmul.f32 1.442695, %v581_v45 }
 0x1d9   :  { %v846_v48 = vadd.f32 -1.0, %v936_v46 }
 0x1da   :  { %937 = vpow2.f32 %v602_v47 }
 0x1db   :  { %v546_v49 = vpop.f32.mrf.mxu2  ;;  %v644_v50 = vmul.f32 1.6732632, %v846_v48 }
 0x1dc   :  { %v547_v51 = vadd.f32 %v1295_v6, %v546_v49 }
 0x1dd   :  { %v676_v53 = vsel %vm660_vm7, %v541_v36, %v644_v50 }
 0x1de   :  { %v582_v54 = vmin.f32 %v547_v51, 0.0  ;;  %736 = vmatmul.f32.gmra.mxu3 %v676_v53  ;;  %vm662_vm9 = vcmp.gt.f32.partialorder %v547_v51, 0.0 }
 0x1e0   :  { %v938_v55 = vpop.eup %937  ;;  %v604_v56 = vmul.f32 1.442695, %v582_v54 }
 0x1e1   :  { %v847_v57 = vadd.f32 -1.0, %v938_v55 }
 0x1e2   :  { %939 = vpow2.f32 %v604_v56 }
 0x1e3   :  { %v549_v52 = vpop.f32.mrf.mxu2  ;;  %v645_v58 = vmul.f32 1.6732632, %v847_v57 }
 0x1e4   :  { %v550_v59 = vadd.f32 %v1295_v6, %v549_v52 }
 0x1e5   :  { %v677_v60 = vsel %vm661_vm8, %v544_v43, %v645_v58 }
 0x1e6   :  { %v583_v61 = vmin.f32 %v550_v59, 0.0  ;;  %739 = vmatmul.f32.gmra.mxu3 %v677_v60  ;;  %vm663_vm10 = vcmp.gt.f32.partialorder %v550_v59, 0.0 }
 0x1e8   :  { %v940_v62 = vpop.eup %939  ;;  %v606_v63 = vmul.f32 1.442695, %v583_v61 }
 0x1e9   :  { %v848_v0 = vadd.f32 -1.0, %v940_v62 }
 0x1ea   :  { %941 = vpow2.f32 %v606_v63 }
 0x1eb   :  { %v552_v1 = vpop.f32.mrf.mxu2  ;;  %v646_v2 = vmul.f32 1.6732632, %v848_v0 }
 0x1ec   :  { %v553_v3 = vadd.f32 %v1295_v6, %v552_v1 }
 0x1ed   :  { %v678_v4 = vsel %vm662_vm9, %v547_v51, %v646_v2 }
 0x1ee   :  { %v584_v5 = vmin.f32 %v553_v3, 0.0  ;;  %742 = vmatmul.f32.gmra.mxu3 %v678_v4  ;;  %vm664_vm11 = vcmp.gt.f32.partialorder %v553_v3, 0.0 }
 0x1f0   :  { %v942_v7 = vpop.eup %941  ;;  %v608_v8 = vmul.f32 1.442695, %v584_v5 }
 0x1f1   :  { %v849_v9 = vadd.f32 -1.0, %v942_v7 }
 0x1f2   :  { %943 = vpow2.f32 %v608_v8 }
 0x1f3   :  { %v555_v10 = vpop.f32.mrf.mxu2  ;;  %v647_v11 = vmul.f32 1.6732632, %v849_v9 }
 0x1f4   :  { %v556_v12 = vadd.f32 %v1295_v6, %v555_v10 }
 0x1f5   :  { %v679_v13 = vsel %vm663_vm10, %v550_v59, %v647_v11 }
 0x1f6   :  { %v585_v14 = vmin.f32 %v556_v12, 0.0  ;;  %745 = vmatmul.f32.gmra.mxu3 %v679_v13  ;;  %vm665_vm12 = vcmp.gt.f32.partialorder %v556_v12, 0.0 }
 0x1f8   :  { %v944_v15 = vpop.eup %943  ;;  %v610_v16 = vmul.f32 1.442695, %v585_v14 }
 0x1f9   :  { %v850_v17 = vadd.f32 -1.0, %v944_v15 }
 0x1fa   :  { %945 = vpow2.f32 %v610_v16 }
 0x1fb   :  { %v558_v18 = vpop.f32.mrf.mxu2  ;;  %v648_v19 = vmul.f32 1.6732632, %v850_v17 }
 0x1fc   :  { %v559_v20 = vadd.f32 %v1295_v6, %v558_v18 }
 0x1fd   :  { %v680_v21 = vsel %vm664_vm11, %v553_v3, %v648_v19 }
 0x1fe   :  { %v586_v22 = vmin.f32 %v559_v20, 0.0  ;;  %748 = vmatmul.f32.gmra.mxu3 %v680_v21  ;;  %vm666_vm13 = vcmp.gt.f32.partialorder %v559_v20, 0.0 }
 0x200   :  { %v946_v23 = vpop.eup %945  ;;  %v612_v24 = vmul.f32 1.442695, %v586_v22 }
 0x201   :  { %v851_v25 = vadd.f32 -1.0, %v946_v23 }
 0x202   :  { %947 = vpow2.f32 %v612_v24 }
 0x203   :  { %v561_v26 = vpop.f32.mrf.mxu2  ;;  %v649_v27 = vmul.f32 1.6732632, %v851_v25 }
 0x204   :  { %v562_v28 = vadd.f32 %v1295_v6, %v561_v26 }
 0x205   :  { %v681_v29 = vsel %vm665_vm12, %v556_v12, %v649_v27 }
 0x206   :  { %v587_v30 = vmin.f32 %v562_v28, 0.0  ;;  %751 = vmatmul.f32.gmra.mxu3 %v681_v29  ;;  %vm667_vm14 = vcmp.gt.f32.partialorder %v562_v28, 0.0 }
 0x208   :  { %v948_v31 = vpop.eup %947  ;;  %v614_v32 = vmul.f32 1.442695, %v587_v30 }
 0x209   :  { %v852_v33 = vadd.f32 -1.0, %v948_v31 }
 0x20a   :  { %949 = vpow2.f32 %v614_v32 }
 0x20b   :  { %v564_v35 = vpop.f32.mrf.mxu2  ;;  %v650_v36 = vmul.f32 1.6732632, %v852_v33 }
 0x20c   :  { %v565_v37 = vadd.f32 %v1295_v6, %v564_v35 }
 0x20d   :  { %v682_v38 = vsel %vm666_vm13, %v559_v20, %v650_v36 }
 0x20e   :  { %v588_v39 = vmin.f32 %v565_v37, 0.0  ;;  %754 = vmatmul.f32.gmra.mxu3 %v682_v38  ;;  %vm668_vm15 = vcmp.gt.f32.partialorder %v565_v37, 0.0 }
 0x210   :  { %v950_v40 = vpop.eup %949  ;;  %v616_v41 = vmul.f32 1.442695, %v588_v39 }
 0x211   :  { %v853_v42 = vadd.f32 -1.0, %v950_v40 }
 0x212   :  { %951 = vpow2.f32 %v616_v41 }
 0x213   :  { %v567_v34 = vpop.f32.mrf.mxu2  ;;  %v651_v43 = vmul.f32 1.6732632, %v853_v42 }
 0x214   :  { %v568_v44 = vadd.f32 %v1295_v6, %v567_v34 }
 0x215   :  { %v683_v45 = vsel %vm667_vm14, %v562_v28, %v651_v43 }
 0x216   :  { %v589_v46 = vmin.f32 %v568_v44, 0.0  ;;  %757 = vmatmul.f32.gmra.mxu3 %v683_v45  ;;  %vm669_vm1 = vcmp.gt.f32.partialorder %v568_v44, 0.0 }
 0x218   :  { %v952_v47 = vpop.eup %951  ;;  %v618_v48 = vmul.f32 1.442695, %v589_v46 }
 0x219   :  { %v854_v49 = vadd.f32 -1.0, %v952_v47 }
 0x21a   :  { %953 = vpow2.f32 %v618_v48 }
 0x21b   :  { %v570_v50 = vpop.f32.mrf.mxu2  ;;  %v652_v51 = vmul.f32 1.6732632, %v854_v49 }
 0x21c   :  { %v571_v53 = vadd.f32 %v1295_v6, %v570_v50 }
 0x21d   :  { %v684_v54 = vsel %vm668_vm15, %v565_v37, %v652_v51 }
 0x21e   :  { %v590_v55 = vmin.f32 %v571_v53, 0.0  ;;  %760 = vmatmul.f32.gmra.mxu3 %v684_v54  ;;  %vm670_vm2 = vcmp.gt.f32.partialorder %v571_v53, 0.0 }
 0x220   :  { %v954_v56 = vpop.eup %953  ;;  %v620_v57 = vmul.f32 1.442695, %v590_v55 }
 0x221   :  { %v855_v52 = vadd.f32 -1.0, %v954_v56 }
 0x222   :  { %955 = vpow2.f32 %v620_v57 }
 0x223   :  { %v573_v58 = vpop.f32.mrf.mxu2  ;;  %v653_v59 = vmul.f32 1.6732632, %v855_v52 }
 0x224   :  { %v574_v60 = vadd.f32 %v1295_v6, %v573_v58  ;;  %v862_v6 = vld [vmem:[%s1388_s8] ss:$0 sm:$0xff] }
 0x225   :  { %v685_v61 = vsel %vm669_vm1, %v568_v44, %v653_v59 }
 0x226   :  { %v591_v62 = vmin.f32 %v574_v60, 0.0  ;;  %763 = vmatmul.f32.gmra.mxu3 %v685_v61  ;;  %vm671_vm3 = vcmp.gt.f32.partialorder %v574_v60, 0.0 }
 0x228   :  { %v956_v63 = vpop.eup %955  ;;  %v622_v0 = vmul.f32 1.442695, %v591_v62 }
 0x229   :  { %v856_v1 = vadd.f32 -1.0, %v956_v63 }
 0x22a   :  { %957 = vpow2.f32 %v622_v0 }
 0x22b   :  { %v654_v2 = vmul.f32 1.6732632, %v856_v1 }
 0x22d   :  { %v686_v3 = vsel %vm670_vm2, %v571_v53, %v654_v2 }
 0x22e   :  { %766 = vmatmul.f32.gmra.mxu3 %v686_v3 }
 0x230   :  { %v958_v4 = vpop.eup %957 }
 0x231   :  { %v857_v5 = vadd.f32 -1.0, %v958_v4 }
 0x233   :  { %v655_v7 = vmul.f32 1.6732632, %v857_v5 }
 0x235   :  { %v687_v8 = vsel %vm671_vm3, %v574_v60, %v655_v7 }
 0x236   :  { %769 = vmatmul.f32.gmra.mxu3 %v687_v8 }
 0x241   :  { %v725_v9 = vpop.f32.mrf.mxu3 }
 0x242   :  { %v726_v10 = vadd.f32 %v862_v6, %v725_v9 }
 0x244   :  { %773 = vst.msk [vmem:[%s1389_s9] sm:$0xff] %vm68_vm0, %v726_v10 }
 0x249   :  { %v728_v11 = vpop.f32.mrf.mxu3 }
 0x24a   :  { %v729_v12 = vadd.f32 %v862_v6, %v728_v11 }
 0x24c   :  { %774 = vst.msk [vmem:[%s1389_s9 + $0x8] sm:$0xff] %vm68_vm0, %v729_v12 }
 0x251   :  { %v731_v13 = vpop.f32.mrf.mxu3 }
 0x252   :  { %v732_v14 = vadd.f32 %v862_v6, %v731_v13 }
 0x254   :  { %775 = vst.msk [vmem:[%s1389_s9 + $0x10] sm:$0xff] %vm68_vm0, %v732_v14 }
 0x259   :  { %v734_v15 = vpop.f32.mrf.mxu3 }
 0x25a   :  { %v735_v16 = vadd.f32 %v862_v6, %v734_v15 }
 0x25c   :  { %776 = vst.msk [vmem:[%s1389_s9 + $0x18] sm:$0xff] %vm68_vm0, %v735_v16 }
 0x261   :  { %v737_v17 = vpop.f32.mrf.mxu3 }
 0x262   :  { %v738_v18 = vadd.f32 %v862_v6, %v737_v17 }
 0x264   :  { %777 = vst.msk [vmem:[%s1389_s9 + $0x20] sm:$0xff] %vm68_vm0, %v738_v18 }
 0x269   :  { %v740_v19 = vpop.f32.mrf.mxu3 }
 0x26a   :  { %v741_v20 = vadd.f32 %v862_v6, %v740_v19 }
 0x26c   :  { %778 = vst.msk [vmem:[%s1389_s9 + $0x28] sm:$0xff] %vm68_vm0, %v741_v20 }
 0x271   :  { %v743_v21 = vpop.f32.mrf.mxu3 }
 0x272   :  { %v744_v22 = vadd.f32 %v862_v6, %v743_v21 }
 0x274   :  { %779 = vst.msk [vmem:[%s1389_s9 + $0x30] sm:$0xff] %vm68_vm0, %v744_v22 }
 0x279   :  { %v746_v23 = vpop.f32.mrf.mxu3 }
 0x27a   :  { %v747_v24 = vadd.f32 %v862_v6, %v746_v23 }
 0x27c   :  { %780 = vst.msk [vmem:[%s1389_s9 + $0x38] sm:$0xff] %vm68_vm0, %v747_v24 }
 0x281   :  { %v749_v25 = vpop.f32.mrf.mxu3 }
 0x282   :  { %v750_v26 = vadd.f32 %v862_v6, %v749_v25 }
 0x284   :  { %781 = vst.msk [vmem:[%s1389_s9 + $0x40] sm:$0xff] %vm68_vm0, %v750_v26 }
 0x289   :  { %v752_v27 = vpop.f32.mrf.mxu3 }
 0x28a   :  { %v753_v28 = vadd.f32 %v862_v6, %v752_v27 }
 0x28c   :  { %782 = vst.msk [vmem:[%s1389_s9 + $0x48] sm:$0xff] %vm68_vm0, %v753_v28 }
 0x291   :  { %v755_v29 = vpop.f32.mrf.mxu3 }
 0x292   :  { %v756_v30 = vadd.f32 %v862_v6, %v755_v29 }
 0x294   :  { %783 = vst.msk [vmem:[%s1389_s9 + $0x50] sm:$0xff] %vm68_vm0, %v756_v30 }
 0x299   :  { %v758_v31 = vpop.f32.mrf.mxu3 }
 0x29a   :  { %v759_v32 = vadd.f32 %v862_v6, %v758_v31 }
 0x29c   :  { %784 = vst.msk [vmem:[%s1389_s9 + $0x58] sm:$0xff] %vm68_vm0, %v759_v32 }
 0x2a1   :  { %v761_v33 = vpop.f32.mrf.mxu3 }
 0x2a2   :  { %v762_v35 = vadd.f32 %v862_v6, %v761_v33 }
 0x2a4   :  { %785 = vst.msk [vmem:[%s1389_s9 + $0x60] sm:$0xff] %vm68_vm0, %v762_v35 }
 0x2a9   :  { %v764_v36 = vpop.f32.mrf.mxu3 }
 0x2aa   :  { %v765_v37 = vadd.f32 %v862_v6, %v764_v36 }
 0x2ac   :  { %786 = vst.msk [vmem:[%s1389_s9 + $0x68] sm:$0xff] %vm68_vm0, %v765_v37 }
 0x2b1   :  { %v767_v38 = vpop.f32.mrf.mxu3 }
 0x2b2   :  { %v768_v39 = vadd.f32 %v862_v6, %v767_v38 }
 0x2b4   :  { %787 = vst.msk [vmem:[%s1389_s9 + $0x70] sm:$0xff] %vm68_vm0, %v768_v39 }
 0x2b9   :  { %v770_v40 = vpop.f32.mrf.mxu3 }
 0x2ba   :  { %v771_v41 = vadd.f32 %v862_v6, %v770_v40 }
 0x2bc   :  { %788 = vst.msk [vmem:[%s1389_s9 + $0x78] sm:$0xff] %vm68_vm0, %v771_v41 }
 0x2bd   :  { %793 = vsyncpa [#allocation3], 1 }

</bundles_post_ra>
